<compile_context>
chip_gen: v6e
topology: v6e:2x2x1
jax: 0.10.0
libtpu: 0.0.40
codegen_flags: <defaults>
</compile_context>

<pallas_src>
import itertools

import numpy as np
import jax
import jax.numpy as jnp
from jax.experimental import pallas as pl
from jax.experimental.pallas import tpu as pltpu


def _round_up(x, m):
    return ((x + m - 1) // m) * m


def _choose_tile(batch, batch_tile):
    """Lane-aligned batch tile; >=2 grid steps when batch > 128 (v7x has 2 TCs)."""
    LANE = 128
    if batch <= LANE:
        return batch                              # single full-array block
    tile = min(batch_tile, _round_up(batch, LANE))
    tile = max(_round_up(tile, LANE), LANE)
    if pl.cdiv(batch, tile) < 2:                  # keep both v7x TensorCores busy
        tile = _round_up(pl.cdiv(batch, 2), LANE)
    return tile


# ----------------------------------------------------------------------------
# Batch-independent vertex / constraint path (plain JAX, tiny).
# Produces effective biases b_eff = b - extra_bias, one per layer.
# ----------------------------------------------------------------------------
def _effective_biases(buffer_vertices, params):
    nv = buffer_vertices.shape[0]

    def layer(v, W, b):
        # v: (nv, in), W: (out, in), b: (1, out)
        h = v @ W.T + b                                                    # (nv, out)
        agree = (h > 0.0).astype(jnp.float32)
        count = jnp.sum(agree, axis=0, keepdims=True)                      # (1, out)
        invalid = jnp.logical_and(count < float(nv), count > 0.0)
        sign = jnp.sign(count - (nv / 2.0 + 0.01))                         # never 0
        extra = jnp.minimum(jnp.min(h * sign - 1e-4, axis=0, keepdims=True), 0.0) * sign
        extra = jnp.where(invalid, extra, 0.0)
        return h - extra, b - extra            # corrected vertex activations, eff. bias

    v = buffer_vertices.astype(jnp.float32)
    v, be0 = layer(v, params["w0"], params["b0"])
    v = jnp.maximum(v, 0.0)
    v, be1 = layer(v, params["w1"], params["b1"])
    v = jnp.maximum(v, 0.0)
    _, be2 = layer(v, params["w2"], params["b2"])
    return be0, be1, be2


# ----------------------------------------------------------------------------
# Main batch kernel: fused 3-layer MLP, batch on the lane axis.
#   x_ref : (state_size, tile)   w*_ref : (out, in)   b*_ref : (out, 1)
#   o_ref : (action_size, tile)
# ----------------------------------------------------------------------------
def _mlp_kernel(x_ref, w0_ref, b0_ref, w1_ref, b1_ref, w2_ref, b2_ref, o_ref):
    h = x_ref[...]
    h = jnp.dot(w0_ref[...], h, preferred_element_type=jnp.float32) + b0_ref[...]
    h = jnp.maximum(h, 0.0)
    h = jnp.dot(w1_ref[...], h, preferred_element_type=jnp.float32) + b1_ref[...]
    h = jnp.maximum(h, 0.0)
    h = jnp.dot(w2_ref[...], h, preferred_element_type=jnp.float32) + b2_ref[...]
    o_ref[...] = h.astype(o_ref.dtype)


# ----------------------------------------------------------------------------
# Host-side wrapper
# ----------------------------------------------------------------------------
def policed_policy_forward(x, params, buffer_vertices, *, batch_tile=4096):
    batch, state_size = x.shape
    width = params["w0"].shape[0]
    action_size = params["w2"].shape[0]

    # Constraint correction folded into effective biases (batch independent).
    be0, be1, be2 = _effective_biases(buffer_vertices, params)
    be0 = be0.reshape(width, 1).astype(jnp.float32)
    be1 = be1.reshape(width, 1).astype(jnp.float32)
    be2 = be2.reshape(action_size, 1).astype(jnp.float32)

    # Lane-dense layout: batch is the last (lane) dimension.
    xt = x.astype(jnp.float32).T                        # (state_size, batch)
    w0 = params["w0"].astype(jnp.float32)               # (width, state_size)
    w1 = params["w1"].astype(jnp.float32)               # (width, width)
    w2 = params["w2"].astype(jnp.float32)               # (action_size, width)

    tile = _choose_tile(batch, batch_tile)
    grid = (pl.cdiv(batch, tile),)                      # ragged tail handled by masking

    col = lambda i: (0, i)                              # tiled over batch lanes
    rep = lambda i: (0, 0)                              # weights/biases VMEM resident

    out_t = pl.pallas_call(
        _mlp_kernel,
        out_shape=jax.ShapeDtypeStruct((action_size, batch), jnp.float32),
        grid=grid,
        in_specs=[pl.BlockSpec((state_size, tile), col),
                  pl.BlockSpec((width, state_size), rep),
                  pl.BlockSpec((width, 1), rep),
                  pl.BlockSpec((width, width), rep),
                  pl.BlockSpec((width, 1), rep),
                  pl.BlockSpec((action_size, width), rep),
                  pl.BlockSpec((action_size, 1), rep)],
        out_specs=pl.BlockSpec((action_size, tile), col),
        compiler_params=pltpu.CompilerParams(
            dimension_semantics=("parallel",),          # shard batch tiles across TCs (v7x)
            vmem_limit_bytes=32 * 1024 * 1024),
    )(xt, w0, be0, w1, be1, w2, be2)

    return out_t.T                                      # (batch, action_size)


# ----------------------------------------------------------------------------
# Pure-JAX reference (mirrors the PyTorch semantics) for verification.
# ----------------------------------------------------------------------------
def _reference_forward(x, params, buffer_vertices):
    nv = buffer_vertices.shape[0]
    h = jnp.concatenate([x, buffer_vertices], axis=0)

    def layer(h, W, b):
        h = h @ W.T + b
        V = h[-nv:, :]
        agree = V > 0.0
        count = jnp.sum(agree.astype(jnp.float32), axis=0, keepdims=True)
        invalid = jnp.logical_and(count < float(nv), count > 0.0)
        sign = jnp.sign(count - (nv / 2.0 + 0.01))
        extra = jnp.minimum(jnp.min(V * sign - 1e-4, axis=0, keepdims=True), 0.0) * sign
        extra = jnp.where(invalid, extra, 0.0)
        return h - extra

    h = jnp.maximum(layer(h, params["w0"], params["b0"]), 0.0)
    h = jnp.maximum(layer(h, params["w1"], params["b1"]), 0.0)
    h = layer(h, params["w2"], params["b2"])
    return h[:-nv]


# ----------------------------------------------------------------------------
# Deterministic parameter / buffer construction
# ----------------------------------------------------------------------------
def _linear_params(key, out_features, in_features):
    kw, kb = jax.random.split(key)
    bound = 1.0 / np.sqrt(in_features)
    W = jax.random.uniform(kw, (out_features, in_features), jnp.float32, -bound, bound)
    b = jax.random.uniform(kb, (1, out_features), jnp.float32, -bound, bound)
    return W, b


def _box_vertices(lb, ub):
    """All 2^d corners of the axis-aligned box [lb, ub] (d = len(lb))."""
    d = lb.shape[0]
    corners = [np.where(np.array(bits, dtype=bool), ub, lb)
               for bits in itertools.product([0, 1], repeat=d)]
    return np.stack(corners).astype(np.float32)


if __name__ == "__main__":
    state_size, action_size, width, batch = 4, 2, 32, 2

    key = jax.random.PRNGKey(0)
    k0, k1, k2, kx, kx2, kbuf = jax.random.split(key, 6)

    w0, b0 = _linear_params(k0, width, state_size)
    w1, b1 = _linear_params(k1, width, width)
    w2, b2 = _linear_params(k2, action_size, width)
    params = {"w0": w0, "b0": b0, "w1": w1, "b1": b1, "w2": w2, "b2": b2}

    # buffer: (state_size, 2) with lb < ub.
    # NOTE: the original __init__ calls vertices(cat((lb, lb))) (likely a typo);
    # we build vertices from (lb, ub) so the constraint path is actually exercised.
    lb = np.array(jax.random.uniform(kbuf, (state_size,), jnp.float32, -1.0, 0.0))
    ub = lb + 0.5
    buffer_vertices = jnp.asarray(_box_vertices(lb, ub))       # (16, 4)

    forward = jax.jit(policed_policy_forward, static_argnames=("batch_tile",))

    # --- small demo batch (module-consistent shapes) ---
    x = jax.random.normal(kx, (batch, state_size), jnp.float32)
    out = jax.block_until_ready(forward(x, params, buffer_vertices))
    ref = jax.block_until_ready(_reference_forward(x, params, buffer_vertices))
    assert out.shape == (batch, action_size)
    np.testing.assert_allclose(np.asarray(out), np.asarray(ref), rtol=1e-3, atol=1e-3)

    # --- secondary check: multi-step "parallel" grid + masked (ragged) edge block ---
    x2 = jax.random.normal(kx2, (300, state_size), jnp.float32)
    out2 = jax.block_until_ready(forward(x2, params, buffer_vertices))
    ref2 = jax.block_until_ready(_reference_forward(x2, params, buffer_vertices))
    np.testing.assert_allclose(np.asarray(out2), np.asarray(ref2), rtol=1e-3, atol=1e-3)

    # TODO(synk): enlarging_buffer()/iter bookkeeping is host-side Python state in the
    # PyTorch module (not part of the tensor forward); rebuild buffer_vertices host-side.
    print("KERNEL_OK")
</pallas_src>

<mosaic_0001>
module attributes {stable_mosaic.version = 11 : i64} {
  func.func @_mlp_kernel(%arg0: i32, %arg1: memref<4x2xf32, #tpu.memory_space<vmem>>, %arg2: memref<32x4xf32, #tpu.memory_space<vmem>>, %arg3: memref<32x1xf32, #tpu.memory_space<vmem>>, %arg4: memref<32x32xf32, #tpu.memory_space<vmem>>, %arg5: memref<32x1xf32, #tpu.memory_space<vmem>>, %arg6: memref<2x32xf32, #tpu.memory_space<vmem>>, %arg7: memref<2x1xf32, #tpu.memory_space<vmem>>, %arg8: memref<2x2xf32, #tpu.memory_space<vmem>>) attributes {dimension_semantics = [#tpu.dimension_semantics<parallel>], iteration_bounds = array<i64: 1>, scalar_prefetch = 0 : i64, scratch_operands = 0 : i64, tpu.core_type = #tpu.core_type<tc>, window_params = [{transform_indices = @transform_0, window_bounds = array<i64: 4, 2>}, {pipeline_mode = #tpu.pipeline_mode<synchronous>, transform_indices = @transform_1, window_bounds = array<i64: 32, 4>}, {pipeline_mode = #tpu.pipeline_mode<synchronous>, transform_indices = @transform_2, window_bounds = array<i64: 32, 1>}, {pipeline_mode = #tpu.pipeline_mode<synchronous>, transform_indices = @transform_3, window_bounds = array<i64: 32, 32>}, {pipeline_mode = #tpu.pipeline_mode<synchronous>, transform_indices = @transform_4, window_bounds = array<i64: 32, 1>}, {pipeline_mode = #tpu.pipeline_mode<synchronous>, transform_indices = @transform_5, window_bounds = array<i64: 2, 32>}, {pipeline_mode = #tpu.pipeline_mode<synchronous>, transform_indices = @transform_6, window_bounds = array<i64: 2, 1>}, {transform_indices = @transform_7, window_bounds = array<i64: 2, 2>}]} {
    %c0 = arith.constant 0 : index
    %c0_0 = arith.constant 0 : index
    %0 = vector.load %arg1[%c0, %c0_0] : memref<4x2xf32, #tpu.memory_space<vmem>>, vector<4x2xf32>
    %c0_1 = arith.constant 0 : index
    %c0_2 = arith.constant 0 : index
    %1 = vector.load %arg2[%c0_1, %c0_2] : memref<32x4xf32, #tpu.memory_space<vmem>>, vector<32x4xf32>
    %cst = arith.constant dense<0.000000e+00> : vector<32x2xf32>
    %2 = tpu.matmul %1, %0, %cst {dimension_numbers = #tpu.dot_dimension_numbers<[1], [0], [0], [1], [0, 0, 1, 1], [], []>} : vector<32x4xf32>, vector<4x2xf32>, vector<32x2xf32> -> vector<32x2xf32>
    %c0_3 = arith.constant 0 : index
    %c0_4 = arith.constant 0 : index
    %3 = vector.load %arg3[%c0_3, %c0_4] : memref<32x1xf32, #tpu.memory_space<vmem>>, vector<32x1xf32>
    %4 = vector.broadcast %3 : vector<32x1xf32> to vector<32x2xf32>
    %5 = arith.addf %2, %4 : vector<32x2xf32>
    %cst_5 = arith.constant 0.000000e+00 : f32
    %6 = vector.broadcast %cst_5 : f32 to vector<32x2xf32>
    %7 = arith.maximumf %5, %6 : vector<32x2xf32>
    %c0_6 = arith.constant 0 : index
    %c0_7 = arith.constant 0 : index
    %8 = vector.load %arg4[%c0_6, %c0_7] : memref<32x32xf32, #tpu.memory_space<vmem>>, vector<32x32xf32>
    %cst_8 = arith.constant dense<0.000000e+00> : vector<32x2xf32>
    %9 = tpu.matmul %8, %7, %cst_8 {dimension_numbers = #tpu.dot_dimension_numbers<[1], [0], [0], [1], [0, 0, 1, 1], [], []>} : vector<32x32xf32>, vector<32x2xf32>, vector<32x2xf32> -> vector<32x2xf32>
    %c0_9 = arith.constant 0 : index
    %c0_10 = arith.constant 0 : index
    %10 = vector.load %arg5[%c0_9, %c0_10] : memref<32x1xf32, #tpu.memory_space<vmem>>, vector<32x1xf32>
    %11 = vector.broadcast %10 : vector<32x1xf32> to vector<32x2xf32>
    %12 = arith.addf %9, %11 : vector<32x2xf32>
    %cst_11 = arith.constant 0.000000e+00 : f32
    %13 = vector.broadcast %cst_11 : f32 to vector<32x2xf32>
    %14 = arith.maximumf %12, %13 : vector<32x2xf32>
    %c0_12 = arith.constant 0 : index
    %c0_13 = arith.constant 0 : index
    %15 = vector.load %arg6[%c0_12, %c0_13] : memref<2x32xf32, #tpu.memory_space<vmem>>, vector<2x32xf32>
    %cst_14 = arith.constant dense<0.000000e+00> : vector<2x2xf32>
    %16 = tpu.matmul %15, %14, %cst_14 {dimension_numbers = #tpu.dot_dimension_numbers<[1], [0], [0], [1], [0, 0, 1, 1], [], []>} : vector<2x32xf32>, vector<32x2xf32>, vector<2x2xf32> -> vector<2x2xf32>
    %c0_15 = arith.constant 0 : index
    %c0_16 = arith.constant 0 : index
    %17 = vector.load %arg7[%c0_15, %c0_16] : memref<2x1xf32, #tpu.memory_space<vmem>>, vector<2x1xf32>
    %18 = vector.broadcast %17 : vector<2x1xf32> to vector<2x2xf32>
    %19 = arith.addf %16, %18 : vector<2x2xf32>
    %c0_17 = arith.constant 0 : index
    %c0_18 = arith.constant 0 : index
    %20 = vector.load %arg8[%c0_17, %c0_18] : memref<2x2xf32, #tpu.memory_space<vmem>>, vector<2x2xf32>
    tpu.vector_store %arg8[%c0_17, %c0_18], %19 {strides = array<i32>} : memref<2x2xf32, #tpu.memory_space<vmem>>, vector<2x2xf32>,
    return
  }
  func.func @transform_0(%arg0: i32) -> (i32, i32) {
    %c0_i32 = arith.constant 0 : i32
    %c0_i32_0 = arith.constant 0 : i32
    return %c0_i32, %arg0 : i32, i32
  }
  func.func @transform_1(%arg0: i32) -> (i32, i32) {
    %c0_i32 = arith.constant 0 : i32
    %c0_i32_0 = arith.constant 0 : i32
    %c0_i32_1 = arith.constant 0 : i32
    return %c0_i32, %c0_i32_0 : i32, i32
  }
  func.func @transform_2(%arg0: i32) -> (i32, i32) {
    %c0_i32 = arith.constant 0 : i32
    %c0_i32_0 = arith.constant 0 : i32
    %c0_i32_1 = arith.constant 0 : i32
    return %c0_i32, %c0_i32_0 : i32, i32
  }
  func.func @transform_3(%arg0: i32) -> (i32, i32) {
    %c0_i32 = arith.constant 0 : i32
    %c0_i32_0 = arith.constant 0 : i32
    %c0_i32_1 = arith.constant 0 : i32
    return %c0_i32, %c0_i32_0 : i32, i32
  }
  func.func @transform_4(%arg0: i32) -> (i32, i32) {
    %c0_i32 = arith.constant 0 : i32
    %c0_i32_0 = arith.constant 0 : i32
    %c0_i32_1 = arith.constant 0 : i32
    return %c0_i32, %c0_i32_0 : i32, i32
  }
  func.func @transform_5(%arg0: i32) -> (i32, i32) {
    %c0_i32 = arith.constant 0 : i32
    %c0_i32_0 = arith.constant 0 : i32
    %c0_i32_1 = arith.constant 0 : i32
    return %c0_i32, %c0_i32_0 : i32, i32
  }
  func.func @transform_6(%arg0: i32) -> (i32, i32) {
    %c0_i32 = arith.constant 0 : i32
    %c0_i32_0 = arith.constant 0 : i32
    %c0_i32_1 = arith.constant 0 : i32
    return %c0_i32, %c0_i32_0 : i32, i32
  }
  func.func @transform_7(%arg0: i32) -> (i32, i32) {
    %c0_i32 = arith.constant 0 : i32
    %c0_i32_0 = arith.constant 0 : i32
    return %c0_i32, %arg0 : i32, i32
  }
}

</mosaic_0001>

<bundles_post_ra>
// kernel: policed_policy_forward.1
= control target key start
LH: loop header
LB: loop body
LE: loop exit
PB: predicated region body
PF: predicated region fallthrough
CT: control target
= control target key end

     0   :  { %vm68_vm0 = vcmask 1043456   ;;  %vm55_vm1 = vcmask 31744   ;;  %v443_v3 = vmov 0   ;;  %vm189_vm2 = vcmask 261120   ;;  %s555_s0 = inlined_call_operand.vmem [shape: f32[4,2], index: 0, kind: input, shape index: {}]   ;;  %s556_s1 = inlined_call_operand.vmem [shape: f32[32,4], index: 1, kind: input, shape index: {}]   ;;  %s557_s2 = inlined_call_operand.vmem [shape: f32[32,1], index: 2, kind: input, shape index: {}]   ;;  %s558_s4 = inlined_call_operand.vmem [shape: f32[32,1], index: 4, kind: input, shape index: {}]   ;;  %s559_s6 = inlined_call_operand.vmem [shape: f32[2,1], index: 6, kind: input, shape index: {}]   ;;  %s560_s3 = inlined_call_operand.vmem [shape: f32[32,32], index: 3, kind: input, shape index: {}]   ;;  %s561_s5 = inlined_call_operand.vmem [shape: f32[2,32], index: 5, kind: input, shape index: {}]   ;;  %s562_s7 = inlined_call_operand.vmem [shape: f32[2,2], index: 7, kind: output, shape index: {}]  }
   0x1   :  { %v26_v0 = vld [vmem:[%s555_s0] sm:$0xf]  ;;  %v28_v2 = vld [vmem:[%s556_s1 + $0x8] sm:$0xff]  ;;  %441 = vset.pattern.permute.xlu0 %v443_v3  ;;  %442 = vset.pattern.permute.xlu1 %v443_v3  ;;  %v29_v4 = vld [vmem:[%s556_s1 + $0x10] sm:$0xff]  ;;  %v444_v35 = vmov 0.0   ;;  %vm445_vm3 = vmmov 0  }
   0x2   :  { %v27_v1 = vld [vmem:[%s556_s1] sm:$0xff]  ;;  %405 = vmatprep.subr.msk.mxu0 %vm68_vm0, %v26_v0  ;;  %v34_v5 = vld [vmem:[%s557_s2 + $0x18] sm:$0xff]  ;;  %v32_v6 = vld [vmem:[%s557_s2 + $0x8] sm:$0xff]  ;;  %vm371_vm4 = vcmask 9216  }
   0x3   :  { %407 = vmatprep.mubr.msk.f32.mxu0 %vm55_vm1, %v27_v1  ;;  %406 = vmatpush3.msk.msra.mxu0 %vm68_vm0, %v26_v0  ;;  %v33_v7 = vld [vmem:[%s557_s2 + $0x10] sm:$0xff]  ;;  %v30_v8 = vld [vmem:[%s556_s1 + $0x18] sm:$0xff]  ;;  %v31_v9 = vld [vmem:[%s557_s2] sm:$0xff] }
   0x4   :  { %52 = vperm.xlu0 %441, %v34_v5   ;;  %408 = vmatmul.mubr.msk.f32.vlgmr.msra.gmra.mxu0 %vm55_vm1, %v28_v2  ;;  %v168_v10 = vld [vmem:[%s558_s4 + $0x18] sm:$0xff]  ;;  %v167_v11 = vld [vmem:[%s558_s4 + $0x10] sm:$0xff]  ;;  %v166_v12 = vld [vmem:[%s558_s4 + $0x8] sm:$0xff] }
   0x5   :  { %42 = vperm.xlu1 %442, %v32_v6   ;;  %410 = vmatprep.mubr.msk.f32.mxu0 %vm55_vm1, %v29_v4  ;;  %v165_v13 = vld [vmem:[%s558_s4] sm:$0xff]  ;;  %v162_v32 = vld [vmem:[%s560_s3 + $0x8] sm:$0xff]  ;;  %v163_v33 = vld [vmem:[%s560_s3 + $0x10] sm:$0xff] }
   0x6   :  { %v292_v14 = vld [vmem:[%s559_s6] sm:$0x3]  ;;  %v164_v34 = vld [vmem:[%s560_s3 + $0x18] sm:$0xff]  ;;  %427 = vmatprep.subr.mxu0 %v444_v35 }
   0x7   :  { %v161_v15 = vld [vmem:[%s560_s3] sm:$0xff] }
   0x8   :  { %47 = vperm.xlu0 %441, %v33_v7   ;;  %411 = vmatmul.mubr.msk.f32.gmra.mxu0 %vm55_vm1, %v30_v8  ;;  %v291_v52 = vld [vmem:[%s561_s5] sm:$0x3] }
   0x9   :  { %37 = vperm.xlu1 %442, %v31_v9   ;;  %421 = vmatprep.mubr.msk.f32.mxu1 %vm189_vm2, %v161_v15 }
   0xa   :  { %435 = vmatprep.mubr.msk.f32.mxu0 %vm445_vm3, %v444_v35 }
   0xc   :  { %186 = vperm.xlu0 %441, %v168_v10  }
   0xd   :  { %181 = vperm.xlu1 %442, %v167_v11  }
  0x10   :  { %176 = vperm.xlu0 %441, %v166_v12  }
  0x11   :  { %171 = vperm.xlu1 %442, %v165_v13  }
  0x14   :  { %295 = vperm.xlu0 %441, %v292_v14  }
  0x7f   :  { %v53_v16 = vpop.permute.xlu0 %52 }
  0x80   :  { %v43_v18 = vpop.permute.xlu1 %42 }
  0x83   :  { %v48_v22 = vpop.permute.xlu0 %47 }
  0x84   :  { %v38_v27 = vpop.permute.xlu1 %37 }
  0x87   :  { %v187_v36 = vpop.permute.xlu0 %186 }
  0x88   :  { %v182_v38 = vpop.permute.xlu1 %181 }
  0x8b   :  { %v177_v42 = vpop.permute.xlu0 %176 }
  0x8c   :  { %v172_v47 = vpop.permute.xlu1 %171 }
  0x8f   :  { %v296_v53 = vpop.permute.xlu0 %295 }
  0xc4   :  { %v409_v17 = vpop.f32.mrf.mxu0 }
  0xc5   :  { %v144_v24 = vadd.f32 %v409_v17, %v43_v18 }
  0xc6   :  { %v138_v19 = vpop.f32.mrf.mxu0 }
  0xc7   :  { %v139_v28 = vadd.f32 %v138_v19, %v38_v27  ;;  %v158_v30 = vmax.f32 %v144_v24, 0.0 }
  0xc8   :  { %v412_v20 = vpop.f32.mrf.mxu0 }
  0xc9   :  { %v154_v21 = vadd.f32 %v412_v20, %v53_v16  ;;  %v157_v31 = vmax.f32 %v139_v28, 0.0 }
  0xca   :  { %v148_v23 = vpop.f32.mrf.mxu0 }
  0xcb   :  { %v160_v25 = vmax.f32 %v154_v21, 0.0  ;;  %v149_v26 = vadd.f32 %v148_v23, %v48_v22 }
  0xcd   :  { %v159_v29 = vmax.f32 %v149_v26, 0.0  ;;  %413 = vmatprep.subr.mxu1 %v160_v25 }
  0xce   :  { %414 = vmatpush3.msra.mxu1 %v160_v25 }
  0xcf   :  { %415 = vmatprep.subr.mxu1 %v159_v29 }
  0xd0   :  { %416 = vmatpush3.msra.mxu1 %v159_v29 }
  0xd1   :  { %417 = vmatprep.subr.mxu1 %v158_v30 }
  0xd2   :  { %418 = vmatpush3.msra.mxu1 %v158_v30 }
  0xd3   :  { %419 = vmatprep.subr.mxu1 %v157_v31 }
  0xd4   :  { %420 = vmatpush3.msra.mxu1 %v157_v31 }
  0xd5   :  { %422 = vmatmul.mubr.msk.f32.vlgmr.msra.gmra.mxu1 %vm189_vm2, %v162_v32 }
  0xd6   :  { %424 = vmatprep.mubr.msk.f32.mxu1 %vm189_vm2, %v163_v33 }
  0xd9   :  { %425 = vmatmul.mubr.msk.f32.gmra.mxu1 %vm189_vm2, %v164_v34 }
 0x195   :  { %v423_v37 = vpop.f32.mrf.mxu1 }
 0x196   :  { %v274_v44 = vadd.f32 %v423_v37, %v177_v42 }
 0x197   :  { %v268_v39 = vpop.f32.mrf.mxu1 }
 0x198   :  { %v269_v48 = vadd.f32 %v268_v39, %v172_v47  ;;  %v288_v50 = vmax.f32 %v274_v44, 0.0 }
 0x199   :  { %v426_v40 = vpop.f32.mrf.mxu1 }
 0x19a   :  { %v284_v41 = vadd.f32 %v426_v40, %v187_v36  ;;  %v287_v51 = vmax.f32 %v269_v48, 0.0 }
 0x19b   :  { %v278_v43 = vpop.f32.mrf.mxu1 }
 0x19c   :  { %v290_v45 = vmax.f32 %v284_v41, 0.0  ;;  %v279_v46 = vadd.f32 %v278_v43, %v182_v38 }
 0x19e   :  { %v289_v49 = vmax.f32 %v279_v46, 0.0  ;;  %428 = vmatpush3.msra.mxu0 %v290_v45 }
 0x19f   :  { %429 = vmatprep.subr.mxu0 %v444_v35 }
 0x1a0   :  { %430 = vmatpush3.msra.mxu0 %v289_v49 }
 0x1a1   :  { %431 = vmatprep.subr.mxu0 %v444_v35 }
 0x1a2   :  { %432 = vmatpush3.msra.mxu0 %v288_v50 }
 0x1a3   :  { %433 = vmatprep.subr.mxu0 %v444_v35 }
 0x1a4   :  { %434 = vmatpush3.msra.mxu0 %v287_v51 }
 0x1a5   :  { %436 = vmatmul.mubr.msk.f32.vlgmr.msra.gmra.mxu0 %vm189_vm2, %v291_v52 }
 0x265   :  { %v367_v54 = vpop.f32.mrf.mxu0 }
 0x266   :  { %v368_v55 = vadd.f32 %v367_v54, %v296_v53 }
 0x267   :  { %v437_v56 = vpop.f32.mrf.mxu0 }
 0x268   :  { %372 = vst.msk [vmem:[%s562_s7] sm:$0x3] %vm371_vm4, %v368_v55 }

</bundles_post_ra>
